<compile_context>
chip_gen: v6e
topology: v6e:2x2x1
jax: 0.10.0
libtpu: 0.0.40
codegen_flags: <defaults>
</compile_context>

<pallas_src>
import functools

import jax
import jax.numpy as jnp
from jax.experimental import pallas as pl
from jax.experimental.pallas import tpu as pltpu


# ---------------------------------------------------------------------------
# Fused kernel: conv(im2col matmul) + ReLU + max-pool + concat
#               + Linear + sigmoid + weighted BCE-with-logits
# ---------------------------------------------------------------------------
def _fused_class_model_kernel(*refs, Ks):
    n_k = len(Ks)
    emb_ref = refs[0]                                # (B, T, D)
    conv_w_refs = refs[1:1 + n_k]                    # each (K*D, Co)  (im2col layout)
    conv_b_refs = refs[1 + n_k:1 + 2 * n_k]          # each (1, Co)
    proj_w_ref, proj_b_ref, y_ref, wt_ref = refs[1 + 2 * n_k:5 + 2 * n_k]
    slab_ref = refs[5 + 2 * n_k]                     # (B, 2*V)  = [act | prob]
    loss_ref = refs[6 + 2 * n_k]                     # (1,) in SMEM

    x = emb_ref[...].astype(jnp.float32)             # (B, T, D)
    _, T, D = x.shape

    pooled = []
    for idx, K in enumerate(Ks):                     # static, unrolled at trace time
        T_out = T - K + 1
        # im2col: K shifted views concatenated along the lane dim -> one matmul
        # with contraction depth K*D instead of K separate D-deep MXU pushes.
        windows = jnp.concatenate(
            [x[:, k:k + T_out, :] for k in range(K)], axis=-1)       # (B, T_out, K*D)
        w = conv_w_refs[idx][...].astype(jnp.float32)                # (K*D, Co)
        b = conv_b_refs[idx][...].astype(jnp.float32)                # (1, Co)
        conv = jax.lax.dot_general(
            windows, w,
            dimension_numbers=(((2,), (0,)), ((), ())),
            preferred_element_type=jnp.float32)                      # (B, T_out, Co)
        act_k = jnp.maximum(conv + b[None, :, :], 0.0)               # ReLU(conv + bias)
        pooled.append(jnp.max(act_k, axis=1))                        # max-pool over time

    h = jnp.concatenate(pooled, axis=-1) if n_k > 1 else pooled[0]   # (B, Co*n_k)

    # Classifier: Linear -> sigmoid; dropout is eval-mode identity.
    pw = proj_w_ref[...].astype(jnp.float32)                         # (F, V)
    pb = proj_b_ref[...].astype(jnp.float32)                         # (1, V)
    act = jnp.dot(h, pw, preferred_element_type=jnp.float32) + pb    # (B, V)
    prob = jax.nn.sigmoid(act)

    # Numerically-stable BCE with logits, elementwise weights, mean reduction
    # (matches F.binary_cross_entropy_with_logits(weight=..., reduction='mean')).
    y = y_ref[...].astype(jnp.float32)
    wt = wt_ref[...].astype(jnp.float32)
    per = (jnp.maximum(act, 0.0) - act * y + jnp.log1p(jnp.exp(-jnp.abs(act)))) * wt

    # Lane-dense output slab: [act | prob] in a single contiguous store.
    slab_ref[...] = jnp.concatenate([act, prob], axis=-1)

    n_elems = per.shape[0] * per.shape[1]
    loss_ref[0] = jnp.sum(per) * (1.0 / n_elems)


# ---------------------------------------------------------------------------
# Wrapper
# ---------------------------------------------------------------------------
def class_model_forward(token_ids, emb_table, conv_params, proj_w, proj_b,
                        labels, weights):
    """Full ClassModel pipeline (eval mode) with a single fused Pallas kernel."""
    # Embedding lookup (gather) + dropout (eval mode => identity). Plain-JAX glue.
    # TODO(synk): at production B/T/vocab, move the gather into the kernel via
    # PrefetchScalarGridSpec scalar-prefetched token ids + row-gather BlockSpec.
    emb = emb_table[token_ids].astype(jnp.float32)        # (B, T, D)
    B, T, D = emb.shape

    Ks = tuple(int(K) for K, _, _ in conv_params)
    conv_ws = [w.reshape(K * D, -1) for K, w, _ in conv_params]   # im2col weight layout
    conv_bs = [b for _, _, b in conv_params]
    V = proj_w.shape[1]

    def zero_map(ndim):
        return lambda i: (0,) * ndim

    in_arrays = [emb, *conv_ws, *conv_bs, proj_w, proj_b, labels, weights]
    in_specs = [pl.BlockSpec(a.shape, zero_map(a.ndim)) for a in in_arrays]

    slab, loss = pl.pallas_call(
        functools.partial(_fused_class_model_kernel, Ks=Ks),
        grid=(1,),
        out_shape=(
            jax.ShapeDtypeStruct((B, 2 * V), jnp.float32),   # [act | prob]
            jax.ShapeDtypeStruct((1,), jnp.float32),          # scalar loss (SMEM)
        ),
        in_specs=in_specs,
        out_specs=(
            pl.BlockSpec((B, 2 * V), zero_map(2)),
            pl.BlockSpec(memory_space=pltpu.MemorySpace.SMEM),
        ),
        compiler_params=pltpu.CompilerParams(
            dimension_semantics=("arbitrary",)),
    )(*in_arrays)

    act = slab[:, :V]
    prob = slab[:, V:]
    return act, loss[0], prob


# ---------------------------------------------------------------------------
# Pure-JAX reference (same math, no Pallas) for a sanity check
# ---------------------------------------------------------------------------
def _reference(token_ids, emb_table, conv_params, proj_w, proj_b, labels, weights):
    emb = emb_table[token_ids].astype(jnp.float32)
    pooled = []
    for K, w, b in conv_params:
        T = emb.shape[1]
        T_out = T - K + 1
        acc = sum(jnp.einsum('btd,dc->btc', emb[:, k:k + T_out, :], w[k])
                  for k in range(K))
        pooled.append(jnp.max(jnp.maximum(acc + b[None, :, :], 0.0), axis=1))
    h = jnp.concatenate(pooled, axis=1)
    act = h @ proj_w + proj_b
    per = jnp.maximum(act, 0.0) - act * labels + jnp.log1p(jnp.exp(-jnp.abs(act)))
    loss = jnp.mean(per * weights)
    return act, loss, jax.nn.sigmoid(act)


if __name__ == "__main__":
    # Small, deterministic config (mirrors opt.enc / opt.classdec):
    #   enc: vSize=50, iSize=32, kn=16 (Co), ks="2,3"  -> mult = 2
    #   classdec: hSize=16 (== kn), vSize=12 labels, dpt (eval => identity)
    B, T = 2, 8
    vocab, D = 50, 32
    Co = 16
    Ks = (2, 3)
    num_labels = 12

    key = jax.random.PRNGKey(0)
    keys = jax.random.split(key, 10)

    token_ids = jax.random.randint(keys[0], (B, T), 0, vocab, dtype=jnp.int32)
    emb_table = jax.random.normal(keys[1], (vocab, D), jnp.float32) * 0.1

    conv_params = []
    for idx, K in enumerate(Ks):
        w = jax.random.normal(keys[2 + idx], (K, D, Co), jnp.float32) * 0.1
        b = jax.random.normal(keys[4 + idx], (1, Co), jnp.float32) * 0.01
        conv_params.append((K, w, b))

    F_dim = Co * len(Ks)                     # mult * (1 + ctx) * hSize = 2*1*16
    proj_w = jax.random.normal(keys[6], (F_dim, num_labels), jnp.float32) * 0.1
    proj_b = jax.random.normal(keys[7], (1, num_labels), jnp.float32) * 0.01

    labels = jax.random.bernoulli(keys[8], 0.5, (B, num_labels)).astype(jnp.float32)
    weights = jax.random.uniform(keys[9], (B, num_labels), jnp.float32, 0.5, 1.5)

    # TODO(synk): dropout is treated as eval-mode identity (no RNG mask in-kernel).
    act, loss, prob = class_model_forward(
        token_ids, emb_table, conv_params, proj_w, proj_b, labels, weights)
    jax.block_until_ready((act, loss, prob))

    ract, rloss, rprob = _reference(
        token_ids, emb_table, conv_params, proj_w, proj_b, labels, weights)
    assert jnp.allclose(act, ract, atol=1e-5), "act mismatch"
    assert jnp.allclose(prob, rprob, atol=1e-5), "prob mismatch"
    assert jnp.allclose(loss, rloss, atol=1e-5), "loss mismatch"

    print("KERNEL_OK")
</pallas_src>

<mosaic_0001>
module attributes {stable_mosaic.version = 11 : i64} {
  func.func @_fused_class_model_kernel(%arg0: i32, %arg1: memref<2x8x32xf32, #tpu.memory_space<vmem>>, %arg2: memref<64x16xf32, #tpu.memory_space<vmem>>, %arg3: memref<96x16xf32, #tpu.memory_space<vmem>>, %arg4: memref<1x16xf32, #tpu.memory_space<vmem>>, %arg5: memref<1x16xf32, #tpu.memory_space<vmem>>, %arg6: memref<32x12xf32, #tpu.memory_space<vmem>>, %arg7: memref<1x12xf32, #tpu.memory_space<vmem>>, %arg8: memref<2x12xf32, #tpu.memory_space<vmem>>, %arg9: memref<2x12xf32, #tpu.memory_space<vmem>>, %arg10: memref<2x24xf32, #tpu.memory_space<vmem>>, %arg11: memref<1xf32, #tpu.memory_space<smem>>) attributes {dimension_semantics = [#tpu.dimension_semantics<arbitrary>], iteration_bounds = array<i64: 1>, scalar_prefetch = 0 : i64, scratch_operands = 0 : i64, tpu.core_type = #tpu.core_type<tc>, window_params = [{pipeline_mode = #tpu.pipeline_mode<synchronous>, transform_indices = @transform_0, window_bounds = array<i64: 2, 8, 32>}, {pipeline_mode = #tpu.pipeline_mode<synchronous>, transform_indices = @transform_1, window_bounds = array<i64: 64, 16>}, {pipeline_mode = #tpu.pipeline_mode<synchronous>, transform_indices = @transform_2, window_bounds = array<i64: 96, 16>}, {pipeline_mode = #tpu.pipeline_mode<synchronous>, transform_indices = @transform_3, window_bounds = array<i64: 1, 16>}, {pipeline_mode = #tpu.pipeline_mode<synchronous>, transform_indices = @transform_4, window_bounds = array<i64: 1, 16>}, {pipeline_mode = #tpu.pipeline_mode<synchronous>, transform_indices = @transform_5, window_bounds = array<i64: 32, 12>}, {pipeline_mode = #tpu.pipeline_mode<synchronous>, transform_indices = @transform_6, window_bounds = array<i64: 1, 12>}, {pipeline_mode = #tpu.pipeline_mode<synchronous>, transform_indices = @transform_7, window_bounds = array<i64: 2, 12>}, {pipeline_mode = #tpu.pipeline_mode<synchronous>, transform_indices = @transform_8, window_bounds = array<i64: 2, 12>}, {pipeline_mode = #tpu.pipeline_mode<synchronous>, transform_indices = @transform_9, window_bounds = array<i64: 2, 24>}, {transform_indices = @transform_10, window_bounds = array<i64: 1>}]} {
    %c0 = arith.constant 0 : index
    %c0_0 = arith.constant 0 : index
    %c0_1 = arith.constant 0 : index
    %0 = vector.load %arg1[%c0, %c0_0, %c0_1] : memref<2x8x32xf32, #tpu.memory_space<vmem>>, vector<2x8x32xf32>
    %1 = vector.extract_strided_slice %0 {offsets = [0, 0, 0], sizes = [2, 7, 32], strides = [1, 1, 1]} : vector<2x8x32xf32> to vector<2x7x32xf32>
    %2 = vector.extract_strided_slice %0 {offsets = [0, 1, 0], sizes = [2, 7, 32], strides = [1, 1, 1]} : vector<2x8x32xf32> to vector<2x7x32xf32>
    %3 = tpu.concatenate %1, %2 in 2 : vector<2x7x32xf32>, vector<2x7x32xf32> -> vector<2x7x64xf32>
    %c0_2 = arith.constant 0 : index
    %c0_3 = arith.constant 0 : index
    %4 = vector.load %arg2[%c0_2, %c0_3] : memref<64x16xf32, #tpu.memory_space<vmem>>, vector<64x16xf32>
    %c0_4 = arith.constant 0 : index
    %c0_5 = arith.constant 0 : index
    %5 = vector.load %arg4[%c0_4, %c0_5] : memref<1x16xf32, #tpu.memory_space<vmem>>, vector<1x16xf32>
    %cst = arith.constant dense<0.000000e+00> : vector<2x7x16xf32>
    %6 = tpu.matmul %3, %4, %cst {dimension_numbers = #tpu.dot_dimension_numbers<[2], [0], [0, 1], [1], [0, 0, 0, 1, 1, 1], [], []>} : vector<2x7x64xf32>, vector<64x16xf32>, vector<2x7x16xf32> -> vector<2x7x16xf32>
    %7 = vector.shape_cast %5 : vector<1x16xf32> to vector<1x1x16xf32>
    %8 = vector.broadcast %7 : vector<1x1x16xf32> to vector<2x7x16xf32>
    %9 = arith.addf %6, %8 : vector<2x7x16xf32>
    %cst_6 = arith.constant 0.000000e+00 : f32
    %10 = vector.broadcast %cst_6 : f32 to vector<2x7x16xf32>
    %11 = arith.maximumf %9, %10 : vector<2x7x16xf32>
    %cst_7 = arith.constant dense<0xFF800000> : vector<2x16xf32>
    %12 = vector.multi_reduction <maximumf>, %11, %cst_7 [1] : vector<2x7x16xf32> to vector<2x16xf32>
    %13 = vector.extract_strided_slice %0 {offsets = [0, 0, 0], sizes = [2, 6, 32], strides = [1, 1, 1]} : vector<2x8x32xf32> to vector<2x6x32xf32>
    %14 = vector.extract_strided_slice %0 {offsets = [0, 1, 0], sizes = [2, 6, 32], strides = [1, 1, 1]} : vector<2x8x32xf32> to vector<2x6x32xf32>
    %15 = vector.extract_strided_slice %0 {offsets = [0, 2, 0], sizes = [2, 6, 32], strides = [1, 1, 1]} : vector<2x8x32xf32> to vector<2x6x32xf32>
    %16 = tpu.concatenate %13, %14, %15 in 2 : vector<2x6x32xf32>, vector<2x6x32xf32>, vector<2x6x32xf32> -> vector<2x6x96xf32>
    %c0_8 = arith.constant 0 : index
    %c0_9 = arith.constant 0 : index
    %17 = vector.load %arg3[%c0_8, %c0_9] : memref<96x16xf32, #tpu.memory_space<vmem>>, vector<96x16xf32>
    %c0_10 = arith.constant 0 : index
    %c0_11 = arith.constant 0 : index
    %18 = vector.load %arg5[%c0_10, %c0_11] : memref<1x16xf32, #tpu.memory_space<vmem>>, vector<1x16xf32>
    %cst_12 = arith.constant dense<0.000000e+00> : vector<2x6x16xf32>
    %19 = tpu.matmul %16, %17, %cst_12 {dimension_numbers = #tpu.dot_dimension_numbers<[2], [0], [0, 1], [1], [0, 0, 0, 1, 1, 1], [], []>} : vector<2x6x96xf32>, vector<96x16xf32>, vector<2x6x16xf32> -> vector<2x6x16xf32>
    %20 = vector.shape_cast %18 : vector<1x16xf32> to vector<1x1x16xf32>
    %21 = vector.broadcast %20 : vector<1x1x16xf32> to vector<2x6x16xf32>
    %22 = arith.addf %19, %21 : vector<2x6x16xf32>
    %cst_13 = arith.constant 0.000000e+00 : f32
    %23 = vector.broadcast %cst_13 : f32 to vector<2x6x16xf32>
    %24 = arith.maximumf %22, %23 : vector<2x6x16xf32>
    %cst_14 = arith.constant dense<0xFF800000> : vector<2x16xf32>
    %25 = vector.multi_reduction <maximumf>, %24, %cst_14 [1] : vector<2x6x16xf32> to vector<2x16xf32>
    %26 = tpu.concatenate %12, %25 in 1 : vector<2x16xf32>, vector<2x16xf32> -> vector<2x32xf32>
    %c0_15 = arith.constant 0 : index
    %c0_16 = arith.constant 0 : index
    %27 = vector.load %arg6[%c0_15, %c0_16] : memref<32x12xf32, #tpu.memory_space<vmem>>, vector<32x12xf32>
    %c0_17 = arith.constant 0 : index
    %c0_18 = arith.constant 0 : index
    %28 = vector.load %arg7[%c0_17, %c0_18] : memref<1x12xf32, #tpu.memory_space<vmem>>, vector<1x12xf32>
    %cst_19 = arith.constant dense<0.000000e+00> : vector<2x12xf32>
    %29 = tpu.matmul %26, %27, %cst_19 {dimension_numbers = #tpu.dot_dimension_numbers<[1], [0], [0], [1], [0, 0, 1, 1], [], []>} : vector<2x32xf32>, vector<32x12xf32>, vector<2x12xf32> -> vector<2x12xf32>
    %30 = vector.broadcast %28 : vector<1x12xf32> to vector<2x12xf32>
    %31 = arith.addf %29, %30 : vector<2x12xf32>
    %32 = arith.negf %31 : vector<2x12xf32>
    %33 = math.exp %32 : vector<2x12xf32>
    %cst_20 = arith.constant 1.000000e+00 : f32
    %34 = vector.broadcast %cst_20 : f32 to vector<2x12xf32>
    %35 = arith.addf %34, %33 : vector<2x12xf32>
    %36 = arith.divf %34, %35 : vector<2x12xf32>
    %c0_21 = arith.constant 0 : index
    %c0_22 = arith.constant 0 : index
    %37 = vector.load %arg8[%c0_21, %c0_22] : memref<2x12xf32, #tpu.memory_space<vmem>>, vector<2x12xf32>
    %c0_23 = arith.constant 0 : index
    %c0_24 = arith.constant 0 : index
    %38 = vector.load %arg9[%c0_23, %c0_24] : memref<2x12xf32, #tpu.memory_space<vmem>>, vector<2x12xf32>
    %cst_25 = arith.constant 0.000000e+00 : f32
    %39 = vector.broadcast %cst_25 : f32 to vector<2x12xf32>
    %40 = arith.maximumf %31, %39 : vector<2x12xf32>
    %41 = arith.mulf %31, %37 : vector<2x12xf32>
    %42 = arith.subf %40, %41 : vector<2x12xf32>
    %43 = math.absf %31 : vector<2x12xf32>
    %cst_26 = arith.constant 0.000000e+00 : f32
    %44 = vector.broadcast %cst_26 : f32 to vector<2x12xf32>
    %45 = arith.subf %44, %43 : vector<2x12xf32>
    %46 = math.exp %45 : vector<2x12xf32>
    %47 = math.log1p %46 : vector<2x12xf32>
    %48 = arith.addf %42, %47 : vector<2x12xf32>
    %49 = arith.mulf %48, %38 : vector<2x12xf32>
    %50 = tpu.concatenate %31, %36 in 1 : vector<2x12xf32>, vector<2x12xf32> -> vector<2x24xf32>
    %c0_27 = arith.constant 0 : index
    %c0_28 = arith.constant 0 : index
    %51 = vector.load %arg10[%c0_27, %c0_28] : memref<2x24xf32, #tpu.memory_space<vmem>>, vector<2x24xf32>
    tpu.vector_store %arg10[%c0_27, %c0_28], %50 {strides = array<i32>} : memref<2x24xf32, #tpu.memory_space<vmem>>, vector<2x24xf32>,
    %52 = vector.shape_cast %49 : vector<2x12xf32> to vector<1x2x12xf32>
    %cst_29 = arith.constant dense<0.000000e+00> : vector<1xf32>
    %53 = vector.multi_reduction <add>, %52, %cst_29 [1, 2] : vector<1x2x12xf32> to vector<1xf32>
    %54 = vector.shape_cast %53 : vector<1xf32> to vector<1x1x1xf32>
    %55 = vector.extract %54[0, 0, 0] : f32 from vector<1x1x1xf32>
    %cst_30 = arith.constant 0.0416666679 : f32
    %56 = arith.mulf %55, %cst_30 : f32
    %c0_31 = arith.constant 0 : index
    %57 = memref.load %arg11[%c0_31] : memref<1xf32, #tpu.memory_space<smem>>
    memref.store %56, %arg11[%c0_31] : memref<1xf32, #tpu.memory_space<smem>>
    return
  }
  func.func @transform_0(%arg0: i32) -> (i32, i32, i32) {
    %c0_i32 = arith.constant 0 : i32
    %c0_i32_0 = arith.constant 0 : i32
    %c0_i32_1 = arith.constant 0 : i32
    %c0_i32_2 = arith.constant 0 : i32
    return %c0_i32, %c0_i32_0, %c0_i32_1 : i32, i32, i32
  }
  func.func @transform_1(%arg0: i32) -> (i32, i32) {
    %c0_i32 = arith.constant 0 : i32
    %c0_i32_0 = arith.constant 0 : i32
    %c0_i32_1 = arith.constant 0 : i32
    return %c0_i32, %c0_i32_0 : i32, i32
  }
  func.func @transform_2(%arg0: i32) -> (i32, i32) {
    %c0_i32 = arith.constant 0 : i32
    %c0_i32_0 = arith.constant 0 : i32
    %c0_i32_1 = arith.constant 0 : i32
    return %c0_i32, %c0_i32_0 : i32, i32
  }
  func.func @transform_3(%arg0: i32) -> (i32, i32) {
    %c0_i32 = arith.constant 0 : i32
    %c0_i32_0 = arith.constant 0 : i32
    %c0_i32_1 = arith.constant 0 : i32
    return %c0_i32, %c0_i32_0 : i32, i32
  }
  func.func @transform_4(%arg0: i32) -> (i32, i32) {
    %c0_i32 = arith.constant 0 : i32
    %c0_i32_0 = arith.constant 0 : i32
    %c0_i32_1 = arith.constant 0 : i32
    return %c0_i32, %c0_i32_0 : i32, i32
  }
  func.func @transform_5(%arg0: i32) -> (i32, i32) {
    %c0_i32 = arith.constant 0 : i32
    %c0_i32_0 = arith.constant 0 : i32
    %c0_i32_1 = arith.constant 0 : i32
    return %c0_i32, %c0_i32_0 : i32, i32
  }
  func.func @transform_6(%arg0: i32) -> (i32, i32) {
    %c0_i32 = arith.constant 0 : i32
    %c0_i32_0 = arith.constant 0 : i32
    %c0_i32_1 = arith.constant 0 : i32
    return %c0_i32, %c0_i32_0 : i32, i32
  }
  func.func @transform_7(%arg0: i32) -> (i32, i32) {
    %c0_i32 = arith.constant 0 : i32
    %c0_i32_0 = arith.constant 0 : i32
    %c0_i32_1 = arith.constant 0 : i32
    return %c0_i32, %c0_i32_0 : i32, i32
  }
  func.func @transform_8(%arg0: i32) -> (i32, i32) {
    %c0_i32 = arith.constant 0 : i32
    %c0_i32_0 = arith.constant 0 : i32
    %c0_i32_1 = arith.constant 0 : i32
    return %c0_i32, %c0_i32_0 : i32, i32
  }
  func.func @transform_9(%arg0: i32) -> (i32, i32) {
    %c0_i32 = arith.constant 0 : i32
    %c0_i32_0 = arith.constant 0 : i32
    %c0_i32_1 = arith.constant 0 : i32
    return %c0_i32, %c0_i32_0 : i32, i32
  }
  func.func @transform_10(%arg0: i32) -> i32 {
    %c0_i32 = arith.constant 0 : i32
    %c0_i32_0 = arith.constant 0 : i32
    return %c0_i32 : i32
  }
}

</mosaic_0001>

<bundles_post_ra>
// kernel: tpu_custom_call.1
= control target key start
LH: loop header
LB: loop body
LE: loop exit
PB: predicated region body
PF: predicated region fallthrough
CT: control target
= control target key end

     0   :  { %16 = vsyncpa [#allocation3], 0  ;;  %s1349_s21 = smov 32   ;;  %s1350_s11 = smov 64   ;;  %s1619_s0 = inlined_call_operand.vmem [shape: f32[2,8,32], index: 0, kind: input, shape index: {}]   ;;  %s1620_s1 = inlined_call_operand.vmem [shape: f32[64,16], index: 1, kind: input, shape index: {}]   ;;  %s1621_s2 = inlined_call_operand.vmem [shape: f32[96,16], index: 2, kind: input, shape index: {}]   ;;  %s1622_s3 = inlined_call_operand.vmem [shape: f32[1,16], index: 3, kind: input, shape index: {}]   ;;  %s1623_s4 = inlined_call_operand.vmem [shape: f32[1,16], index: 4, kind: input, shape index: {}]   ;;  %s1624_s5 = inlined_call_operand.vmem [shape: f32[32,12], index: 5, kind: input, shape index: {}]   ;;  %s1625_s6 = inlined_call_operand.vmem [shape: f32[1,12], index: 6, kind: input, shape index: {}]   ;;  %s1626_s7 = inlined_call_operand.vmem [shape: f32[2,12], index: 7, kind: input, shape index: {}]   ;;  %s1627_s8 = inlined_call_operand.vmem [shape: f32[2,12], index: 8, kind: input, shape index: {}]   ;;  %s1628_s9 = inlined_call_operand.hbm [shape: f32[2,24], index: 9, kind: output, shape index: {0}]   ;;  %s1629_s10 = inlined_call_operand.hbm [shape: f32[1], index: 10, kind: output, shape index: {1}]  }
   0x1   :  { %v1417_v0 = vld [vmem:[%s1619_s0 + $0x8] sm:$0xff]  ;;  %v1422_v1 = vld [vmem:[%s1619_s0] sm:$0xff]  ;;  %v745_v2 = vld [vmem:[%s1621_s2 + $0x58] sm:$0xff] }
   0x2   :  { %v41_v3 = vrot.slane %v1417_v0, 1  ;;  %v40_v4 = vrot.slane %v1422_v1, 1  ;;  %1259 = vmatprep.subr.mxu1 %v745_v2  ;;  %v744_v5 = vld [vmem:[%s1621_s2 + $0x50] sm:$0xff]  ;;  %v725_v6 = vrot.slane %v1417_v0, 2  ;;  %v724_v7 = vrot.slane %v1422_v1, 2  ;;  %v743_v8 = vld [vmem:[%s1621_s2 + $0x48] sm:$0xff] }
   0x3   :  { %1260 = vmatpush3.msra.mxu1 %v745_v2  ;;  %v58_v9 = vld [vmem:[%s1620_s1 + $0x38] sm:$0xff]  ;;  %v57_v10 = vld [vmem:[%s1620_s1 + $0x30] sm:$0xff]  ;;  %v742_v11 = vld [vmem:[%s1621_s2 + $0x40] sm:$0xff] }
   0x4   :  { %44 = vrot.lane.b32.xlu1 %v41_v3, %s1349_s21  ;;  %42 = vrot.lane.b32.xlu0 %v40_v4, %s1349_s21  ;;  %v56_v12 = vld [vmem:[%s1620_s1 + $0x28] sm:$0xff] }
   0x5   :  { %1261 = vmatprep.subr.mxu1 %v744_v5  ;;  %1240 = vmatprep.subr.mxu0 %v58_v9 }
   0x6   :  { %1262 = vmatpush3.msra.mxu1 %v744_v5  ;;  %1241 = vmatpush3.msra.mxu0 %v58_v9 }
   0x7   :  { %1263 = vmatprep.subr.mxu1 %v743_v8  ;;  %1242 = vmatprep.subr.mxu0 %v57_v10 }
   0x8   :  { %728 = vrot.lane.b32.xlu1 %v725_v6, %s1350_s11  ;;  %726 = vrot.lane.b32.xlu0 %v724_v7, %s1350_s11 }
   0x9   :  { %17 = vsyncpa [#allocation4], 0  ;;  %1264 = vmatpush3.msra.mxu1 %v743_v8  ;;  %v741_v13 = vld [vmem:[%s1621_s2 + $0x38] sm:$0xff]  ;;  %1243 = vmatpush3.msra.mxu0 %v57_v10  ;;  %v55_v14 = vld [vmem:[%s1620_s1 + $0x20] sm:$0xff]  ;;  %v1351_v26 = vmov 1966171168   ;;  %v71_v28 = vlaneseq }
   0xa   :  { %1265 = vmatprep.subr.mxu1 %v742_v11  ;;  %1244 = vmatprep.subr.mxu0 %v56_v12  ;;  %v740_v15 = vld [vmem:[%s1621_s2 + $0x30] sm:$0xff]  ;;  %v54_v16 = vld [vmem:[%s1620_s1 + $0x18] sm:$0xff]  ;;  %v739_v17 = vld [vmem:[%s1621_s2 + $0x28] sm:$0xff]  ;;  %v69_v27 = vunpack.c.l.s4 %v1351_v26  ;;  %v1352_v31 = vmov 1983009808   ;;  %vm48_vm0 = vcmask 261120  }
   0xb   :  { %1266 = vmatpush3.msra.mxu1 %v742_v11  ;;  %1245 = vmatpush3.msra.mxu0 %v56_v12  ;;  %v53_v18 = vld [vmem:[%s1620_s1 + $0x10] sm:$0xff]  ;;  %v738_v19 = vld [vmem:[%s1621_s2 + $0x20] sm:$0xff]  ;;  %v52_v20 = vld [vmem:[%s1620_s1 + $0x8] sm:$0xff]  ;;  %v72_v30 = vshrl.u32 %v71_v28, 7  ;;  %v756_v32 = vunpack.c.l.s4 %v1352_v31  ;;  %vm391_vm1 = vcmask 523264   ;;  %vm854_vm2 = vcmask 785408  }
   0xc   :  { %1267 = vmatprep.subr.mxu1 %v741_v13  ;;  %1246 = vmatprep.subr.mxu0 %v55_v14  ;;  %v737_v21 = vld [vmem:[%s1621_s2 + $0x18] sm:$0xff]  ;;  %v51_v22 = vld [vmem:[%s1620_s1] sm:$0xff]  ;;  %v736_v23 = vld [vmem:[%s1621_s2 + $0x10] sm:$0xff]  ;;  %v70_v29 = vunpack.c.0.s8 %v69_v27  ;;  %vm1013_vm3 = vcmask 128000   ;;  %vm1354_vm4 = vmmov 0   ;;  %vm1030_vm5 = vcmask 1041409  }
   0xd   :  { %1268 = vmatpush3.msra.mxu1 %v741_v13  ;;  %1247 = vmatpush3.msra.mxu0 %v55_v14  ;;  %v735_v24 = vld [vmem:[%s1621_s2 + $0x8] sm:$0xff]  ;;  %v734_v25 = vld [vmem:[%s1621_s2] sm:$0xff]  ;;  %v757_v34 = vunpack.c.0.s8 %v756_v32  ;;  %s1355_s23 = smov 16   ;;  %vm709_vm6 = vcmask 129024   ;;  %vm1039_vm7 = vcmask 130048   ;;  %vm1159_vm9 = vcmask 91136  }
   0xe   :  { %1269 = vmatprep.subr.mxu1 %v740_v15  ;;  %1248 = vmatprep.subr.mxu0 %v54_v16  ;;  %v1488_v33 = vsub.s32 %v70_v29, %v72_v30  ;;  %vm1155_vm10 = vcmask 97280   ;;  %vm1157_vm11 = vcmask 189440  }
   0xf   :  { %1270 = vmatpush3.msra.mxu1 %v740_v15  ;;  %1249 = vmatpush3.msra.mxu0 %v54_v16  ;;  %v1496_v43 = vsub.s32 %v757_v34, %v72_v30 }
  0x10   :  { %1271 = vmatprep.subr.mxu1 %v739_v17  ;;  %1250 = vmatprep.subr.mxu0 %v53_v18 }
  0x11   :  { %1272 = vmatpush3.msra.mxu1 %v739_v17  ;;  %1251 = vmatpush3.msra.mxu0 %v53_v18 }
  0x12   :  { %1273 = vmatprep.subr.mxu1 %v738_v19  ;;  %1252 = vmatprep.subr.mxu0 %v52_v20 }
  0x13   :  { %1274 = vmatpush3.msra.mxu1 %v738_v19  ;;  %1253 = vmatpush3.msra.mxu0 %v52_v20 }
  0x14   :  { %1275 = vmatprep.subr.mxu1 %v737_v21  ;;  %1254 = vmatprep.subr.mxu0 %v51_v22 }
  0x15   :  { %1276 = vmatpush3.msra.mxu1 %v737_v21  ;;  %1255 = vmatpush3.msra.mxu0 %v51_v22 }
  0x16   :  { %1277 = vmatprep.subr.mxu1 %v736_v23 }
  0x17   :  { %1278 = vmatpush3.msra.mxu1 %v736_v23 }
  0x18   :  { %1279 = vmatprep.subr.mxu1 %v735_v24 }
  0x19   :  { %1280 = vmatpush3.msra.mxu1 %v735_v24 }
  0x1a   :  { %1281 = vmatprep.subr.mxu1 %v734_v25 }
  0x1b   :  { %1282 = vmatpush3.msra.mxu1 %v734_v25 }
  0x76   :  { %v45_v35 = vpop.permute.xlu1 %44  ;;  %v43_v36 = vpop.permute.xlu0 %42 }
  0x77   :  { %v50_v37 = vsel %vm48_vm0, %v1417_v0, %v45_v35  ;;  %v49_v38 = vsel %vm48_vm0, %v1422_v1, %v43_v36 }
  0x78   :  { %v115_v39 = vcombine.high %v50_v37, %v50_v37  ;;  %v122_v40 = vrot.slane %v50_v37, %v1488_v33  ;;  %v67_v41 = vcombine.high %v49_v38, %v49_v38  ;;  %v74_v42 = vrot.slane %v49_v38, %v1488_v33 }
  0x7a   :  { %v129_v44 = vrot.slane %v115_v39, %v1488_v33  ;;  %v130_v45 = vcombine.high %v122_v40, %v122_v40  ;;  %v138_v46 = vrot.slane %v122_v40, %v1488_v33  ;;  %v81_v47 = vrot.slane %v67_v41, %v1488_v33  ;;  %v729_v48 = vpop.permute.xlu1 %728  ;;  %v727_v49 = vpop.permute.xlu0 %726  ;;  %v1044_v41 = vld [vmem:[%s1624_s5 + $0x18] sm:$0xff] }
  0x7b   :  { %v82_v50 = vcombine.high %v74_v42, %v74_v42  ;;  %v90_v51 = vrot.slane %v74_v42, %v1488_v33  ;;  %v733_v52 = vsel %vm391_vm1, %v50_v37, %v729_v48  ;;  %v732_v53 = vsel %vm391_vm1, %v49_v38, %v727_v49 }
  0x7c   :  { %v131_v54 = vcombine.high %v129_v44, %v129_v44  ;;  %v145_v55 = vrot.slane %v129_v44, %v1488_v33  ;;  %v152_v56 = vrot.slane %v130_v45, %v1488_v33  ;;  %v160_v57 = vcombine.high %v138_v46, %v138_v46  ;;  %v1043_v44 = vld [vmem:[%s1624_s5 + $0x10] sm:$0xff]  ;;  %v1042_v45 = vld [vmem:[%s1624_s5 + $0x8] sm:$0xff] }
  0x7d   :  { %v83_v58 = vcombine.high %v81_v47, %v81_v47  ;;  %v97_v59 = vrot.slane %v81_v47, %v1488_v33  ;;  %v104_v60 = vrot.slane %v82_v50, %v1488_v33  ;;  %v770_v61 = vcombine.high %v733_v52, %v733_v52 }
  0x7e   :  { %v159_v62 = vrot.slane %v131_v54, %v1488_v33  ;;  %v161_v63 = vcombine.high %v145_v55, %v145_v55  ;;  %v162_v0 = vcombine.high %v152_v56, %v152_v56  ;;  %v260_v1 = vcombine.low %v152_v56, %v160_v57 }
  0x7f   :  { %v111_v2 = vrot.slane %v83_v58, %v1488_v33  ;;  %v113_v3 = vcombine.high %v97_v59, %v97_v59  ;;  %v211_v4 = vcombine.low %v90_v51, %v104_v60  ;;  %v1201_v5 = vcombine.high %v90_v51, %v104_v60 }
  0x80   :  { %v261_v6 = vcombine.low %v162_v0, %v145_v55  ;;  %v262_v7 = vcombine.low %v159_v62, %v161_v63  ;;  %v269_v8 = vrot.slane %v260_v1, %v1488_v33  ;;  %v777_v9 = vrot.slane %v733_v52, %v1496_v43 }
  0x81   :  { %v784_v10 = vrot.slane %v770_v61, %v1496_v43  ;;  %v754_v11 = vcombine.high %v732_v53, %v732_v53  ;;  %v761_v12 = vrot.slane %v732_v53, %v1496_v43  ;;  %v213_v13 = vcombine.low %v97_v59, %v111_v2 }
  0x82   :  { %v276_v14 = vrot.slane %v261_v6, %v1488_v33  ;;  %v785_v15 = vcombine.high %v777_v9, %v777_v9  ;;  %v214_v16 = vcombine.low %v113_v3, %v138_v46  ;;  %v221_v17 = vrot.slane %v211_v4, %v1488_v33  ;;  %v1205_v46 = vld [vmem:[%s1623_s4] ss:$0 sm:$0xff] }
  0x83   :  { %v768_v18 = vrot.slane %v754_v11, %v1496_v43  ;;  %v769_v19 = vcombine.high %v761_v12, %v761_v12  ;;  %v228_v20 = vrot.slane %v1201_v5, %v1488_v33  ;;  %v235_v21 = vrot.slane %v213_v13, %v1488_v33 }
  0x84   :  { %v242_v22 = vrot.slane %v214_v16, %v1488_v33  ;;  %v283_v23 = vrot.slane %v262_v7, %v1488_v33  ;;  %v284_v24 = vcombine.low %v269_v8, %v276_v14  ;;  %v819_v28 = vcombine.low %v785_v15, %v784_v10 }
  0x85   :  { %v802_v25 = vcombine.low %v761_v12, %v769_v19  ;;  %v803_v26 = vcombine.low %v768_v18, %v777_v9  ;;  %v243_v27 = vcombine.low %v221_v17, %v228_v20  ;;  %v1353_v42 = vmov 0.0  }
  0x86   :  { %v244_v29 = vcombine.low %v235_v21, %v242_v22  ;;  %v291_v30 = vrot.slane %v284_v24, %v1488_v33  ;;  %v298_v31 = vrot.slane %v283_v23, %v1488_v33  ;;  %v826_v39 = vrot.slane %v819_v28, %v1496_v43  ;;  %1286 = vmatprep.subr.mxu0 %v1353_v42  ;;  %v1041_v23 = vld [vmem:[%s1624_s5] sm:$0xff] }
  0x87   :  { %v810_v32 = vrot.slane %v802_v25, %v1496_v43  ;;  %v817_v34 = vrot.slane %v803_v26, %v1496_v43  ;;  %v251_v35 = vrot.slane %v243_v27, %v1488_v33  ;;  %v786_v47 = vcombine.high %v1205_v46, %v1205_v46 }
  0x88   :  { %v258_v36 = vrot.slane %v244_v29, %v1488_v33  ;;  %v299_v38 = vcombine.low %v291_v30, %v298_v31  ;;  %v793_v48 = vrot.slane %v1205_v46, %v1496_v43 }
  0x89   :  { %v818_v37 = vcombine.low %v810_v32, %v817_v34  ;;  %v800_v49 = vrot.slane %v786_v47, %v1496_v43 }
  0x8a   :  { %v259_v40 = vcombine.low %v251_v35, %v258_v36  ;;  %v801_v50 = vcombine.high %v793_v48, %v793_v48  ;;  %v1200_v35 = vld [vmem:[%s1622_s3] ss:$0 sm:$0xff] }
  0x8b   :  { %1283 = vmatprep.mubr.msk.f32.mxu1 %vm854_vm2, %v818_v37  ;;  %v828_v52 = vcombine.low %v800_v49, %v793_v48  ;;  %v163_v36 = vcombine.high %v1200_v35, %v1200_v35 }
  0x8c   :  { %1284 = vmatmul.mubr.msk.f32.vlgmr.msra.gmra.mxu1 %vm854_vm2, %v826_v39  ;;  %1256 = vmatprep.mubr.msk.f32.mxu0 %vm391_vm1, %v259_v40  ;;  %v827_v51 = vcombine.low %v793_v48, %v801_v50  ;;  %v844_v53 = vcombine.low %v801_v50, %v800_v49 }
  0x8d   :  { %1257 = vmatmul.mubr.msk.f32.vlgmr.msra.gmra.mxu0 %vm391_vm1, %v299_v38  ;;  %v842_v55 = vrot.slane %v828_v52, %v1496_v43  ;;  %v177_v37 = vrot.slane %v163_v36, %v1488_v33  ;;  %v170_v38 = vrot.slane %v1200_v35, %v1488_v33 }
  0x8e   :  { %1287 = vmatpush3.msra.mxu0 %v1044_v41  ;;  %v835_v54 = vrot.slane %v827_v51, %v1496_v43  ;;  %v851_v56 = vrot.slane %v844_v53, %v1496_v43  ;;  %1294 = vmatprep.mubr.msk.f32.mxu0 %vm1354_vm4, %v1353_v42 }
  0x8f   :  { %1288 = vmatprep.subr.mxu0 %v1353_v42  ;;  %v179_v39 = vcombine.high %v177_v37, %v177_v37  ;;  %v193_v40 = vrot.slane %v177_v37, %v1488_v33  ;;  %v178_v41 = vcombine.high %v170_v38, %v170_v38 }
  0x90   :  { %1289 = vmatpush3.msra.mxu0 %v1043_v44  ;;  %v843_v57 = vcombine.low %v835_v54, %v842_v55 }
  0x91   :  { %1290 = vmatprep.subr.mxu0 %v1353_v42  ;;  %v209_v44 = vcombine.high %v193_v40, %v193_v40  ;;  %v200_v46 = vrot.slane %v178_v41, %v1488_v33 }
  0x92   :  { %1291 = vmatpush3.msra.mxu0 %v1042_v45  ;;  %v186_v45 = vrot.slane %v170_v38, %v1488_v33 }
  0x93   :  { %1292 = vmatprep.subr.mxu0 %v1353_v42  ;;  %v207_v42 = vrot.slane %v179_v39, %v1488_v33  ;;  %v210_v52 = vcombine.high %v200_v46, %v200_v46 }
  0x94   :  { %1293 = vmatpush3.msra.mxu0 %v1041_v23  ;;  %v300_v47 = vcombine.low %v186_v45, %v200_v46  ;;  %v1202_v48 = vcombine.high %v186_v45, %v200_v46  ;;  %v303_v50 = vcombine.low %v209_v44, %v186_v45  ;;  %v208_v51 = vcombine.high %v186_v45, %v186_v45 }
  0x95   :  { %v302_v49 = vcombine.low %v193_v40, %v207_v42 }
  0x96   :  { %v310_v53 = vrot.slane %v300_v47, %v1488_v33  ;;  %v317_v54 = vrot.slane %v1202_v48, %v1488_v33 }
  0x97   :  { %v324_v55 = vrot.slane %v302_v49, %v1488_v33 }
 0x14c   :  { %v1285_v58 = vpop.f32.mrf.mxu1 }
 0x14d   :  { %v931_v59 = vadd.f32 %v1285_v58, %v851_v56  ;;  %v331_v56 = vrot.slane %v303_v50, %v1488_v33  ;;  %v350_v58 = vcombine.low %v210_v52, %v193_v40 }
 0x14e   :  { %v925_v60 = vpop.f32.mrf.mxu1 }
 0x14f   :  { %v959_v61 = vrot.slane %v931_v59, %v1496_v43  ;;  %v926_v62 = vadd.f32 %v925_v60, %v843_v57  ;;  %v349_v57 = vcombine.low %v200_v46, %v208_v51  ;;  %v332_v59 = vcombine.low %v310_v53, %v317_v54 }
 0x150   :  { %v333_v60 = vcombine.low %v324_v55, %v331_v56 }
 0x151   :  { %v936_v63 = vcombine.high %v926_v62, %v926_v62  ;;  %v943_v0 = vrot.slane %v926_v62, %v1496_v43  ;;  %v960_v1 = vcombine.high %v959_v61, %v959_v61  ;;  %v971_v8 = vmax.f32 %v959_v61, 0.0 }
 0x152   :  { %v351_v61 = vcombine.low %v207_v42, %v209_v44  ;;  %v358_v62 = vrot.slane %v349_v57, %v1488_v33 }
 0x153   :  { %v950_v2 = vrot.slane %v936_v63, %v1496_v43  ;;  %v951_v3 = vcombine.high %v943_v0, %v943_v0  ;;  %v967_v5 = vmax.f32 %v943_v0, 0.0  ;;  %v972_v9 = vmax.f32 %v960_v1, 0.0 }
 0x154   :  { %v365_v63 = vrot.slane %v350_v58, %v1488_v33  ;;  %v340_v0 = vrot.slane %v332_v59, %v1488_v33  ;;  %v347_v1 = vrot.slane %v333_v60, %v1488_v33 }
 0x155   :  { %v952_v4 = vcombine.high %v950_v2, %v950_v2  ;;  %v968_v6 = vmax.f32 %v951_v3, 0.0  ;;  %v969_v7 = vmax.f32 %v950_v2, 0.0  ;;  %v1009_v15 = vrot.slane %v972_v9, %v1496_v43  ;;  %v1258_v2 = vpop.f32.mrf.mxu0 }
 0x156   :  { %v372_v3 = vrot.slane %v351_v61, %v1488_v33 }
 0x157   :  { %v970_v10 = vmax.f32 %v952_v4, 0.0  ;;  %v979_v11 = vcombine.low %v967_v5, %v968_v6  ;;  %v993_v13 = vrot.slane %v969_v7, %v1496_v43  ;;  %v373_v4 = vcombine.low %v358_v62, %v365_v63  ;;  %v462_v6 = vpop.f32.mrf.mxu0 }
 0x158   :  { %v348_v5 = vcombine.low %v340_v0, %v347_v1 }
 0x159   :  { %v986_v12 = vrot.slane %v979_v11, %v1496_v43  ;;  %v995_v14 = vcombine.low %v970_v10, %v971_v8  ;;  %v380_v7 = vrot.slane %v373_v4, %v1488_v33  ;;  %v387_v8 = vrot.slane %v372_v3, %v1488_v33 }
 0x15a   :  { %v463_v9 = vadd.f32 %v462_v6, %v348_v5 }
 0x15b   :  { %v994_v16 = vcombine.low %v986_v12, %v993_v13  ;;  %v1002_v17 = vrot.slane %v995_v14, %v1496_v43  ;;  %v388_v10 = vcombine.low %v380_v7, %v387_v8 }
 0x15c   :  { %v473_v11 = vcombine.high %v463_v9, %v463_v9 }
 0x15d   :  { %v1010_v18 = vcombine.low %v1002_v17, %v1009_v15  ;;  %v1014_v19 = vsel %vm1013_vm3, %v994_v16, -inf  ;;  %v468_v12 = vadd.f32 %v1258_v2, %v388_v10  ;;  %v480_v15 = vrot.slane %v463_v9, %v1488_v33 }
 0x15e   :  { %v1015_v20 = vrot.slane %v1014_v19, 4  ;;  %v487_v13 = vrot.slane %v473_v11, %v1488_v33 }
 0x15f   :  { %v1021_v21 = vsel %vm1013_vm3, %v1010_v18, -inf  ;;  %v529_v14 = vrot.slane %v468_v12, %v1488_v33  ;;  %v488_v18 = vcombine.high %v480_v15, %v480_v15 }
 0x160   :  { %v1022_v22 = vrot.slane %v1021_v21, 4  ;;  %v1016_v24 = vmax.f32 %v1014_v19, %v1015_v20  ;;  %v489_v16 = vcombine.high %v487_v13, %v487_v13  ;;  %v522_v19 = vcombine.high %v468_v12, %v468_v12 }
 0x161   :  { %v537_v17 = vcombine.high %v529_v14, %v529_v14  ;;  %v510_v23 = vrot.slane %v488_v18, %v1488_v33 }
 0x162   :  { %v1023_v25 = vmax.f32 %v1021_v21, %v1022_v22  ;;  %v1017_v26 = vrot.slane %v1016_v24, 2  ;;  %v517_v20 = vrot.slane %v489_v16, %v1488_v33  ;;  %v545_v21 = vrot.slane %v529_v14, %v1488_v33 }
 0x163   :  { %v559_v22 = vrot.slane %v537_v17, %v1488_v33  ;;  %v584_v45 = vmax.f32 %v510_v23, 0.0 }
 0x164   :  { %v1024_v27 = vrot.slane %v1023_v25, 2  ;;  %v1018_v28 = vmax.f32 %v1016_v24, %v1017_v26  ;;  %v536_v24 = vrot.slane %v522_v19, %v1488_v33  ;;  %v521_v26 = vcombine.high %v517_v20, %v517_v20 }
 0x165   :  { %v592_v35 = vmax.f32 %v559_v22, 0.0  ;;  %v591_v37 = vmax.f32 %v545_v21, 0.0  ;;  %v588_v40 = vmax.f32 %v517_v20, 0.0 }
 0x166   :  { %v1025_v29 = vmax.f32 %v1023_v25, %v1024_v27  ;;  %v1019_v43 = vrot.slane %v1018_v28, 1  ;;  %v496_v25 = vrot.slane %v480_v15, %v1488_v33  ;;  %v567_v27 = vcombine.high %v545_v21, %v545_v21 }
 0x168   :  { %v1026_v30 = vrot.slane %v1025_v29, 1  ;;  %v1020_v31 = vmax.f32 %v1018_v28, %v1019_v43  ;;  %v568_v28 = vcombine.high %v559_v22, %v559_v22  ;;  %v538_v43 = vcombine.high %v536_v24, %v536_v24 }
 0x169   :  { %v593_v36 = vmax.f32 %v567_v27, 0.0  ;;  %v583_v51 = vmax.f32 %v496_v25, 0.0  ;;  %v1208_v27 = vld [vmem:[%s1625_s6] ss:$0 sm:$0xff]  ;;  %s1356_s6 = smov 12  }
 0x16a   :  { %v1027_v32 = vmax.f32 %v1025_v29, %v1026_v30  ;;  %v520_v29 = vcombine.high %v510_v23, %v510_v23  ;;  %v552_v30 = vrot.slane %v536_v24, %v1488_v33  ;;  %v594_v38 = vmax.f32 %v568_v28, 0.0 }
 0x16b   :  { %v566_v41 = vrot.slane %v538_v43, %v1488_v33  ;;  %v660_v49 = vcombine.low %v592_v35, %v593_v36  ;;  %v611_v56 = vcombine.low %v583_v51, %v584_v45  ;;  %v1132_v51 = vld [vmem:[%s1627_s8] sm:$0x3] }
 0x16c   :  { %v1035_v34 = vsel %vm1030_vm5, %v1027_v32, %v1020_v31  ;;  %v503_v31 = vrot.slane %v487_v13, %v1488_v33  ;;  %v518_v32 = vcombine.high %v496_v25, %v496_v25  ;;  %v586_v39 = vmax.f32 %v520_v29, 0.0 }
 0x16d   :  { %1036 = vrot.lane.b32.xlu0 %v1035_v34, %s1355_s23  ;;  %v590_v34 = vmax.f32 %v521_v26, 0.0  ;;  %v595_v42 = vmax.f32 %v552_v30, 0.0  ;;  %v596_v54 = vmax.f32 %v566_v41, 0.0  ;;  %v675_v58 = vrot.slane %v660_v49, %v1488_v33 }
 0x16e   :  { %v519_v44 = vcombine.high %v503_v31, %v503_v31  ;;  %v585_v46 = vmax.f32 %v518_v32, 0.0  ;;  %v587_v47 = vmax.f32 %v503_v31, 0.0  ;;  %v620_v63 = vrot.slane %v611_v56, %v1488_v33 }
 0x16f   :  { %v659_v48 = vcombine.low %v590_v34, %v591_v37  ;;  %v661_v50 = vcombine.low %v594_v38, %v595_v42  ;;  %v689_v62 = vrot.slane %v596_v54, %v1488_v33 }
 0x170   :  { %v612_v52 = vcombine.low %v585_v46, %v586_v39  ;;  %v613_v53 = vcombine.low %v587_v47, %v588_v40  ;;  %v589_v55 = vmax.f32 %v519_v44, 0.0  ;;  %v1131_v40 = vld [vmem:[%s1626_s7] sm:$0x3]  ;;  %s1357_s7 = smov [#allocation2]  }
 0x171   :  { %v668_v57 = vrot.slane %v659_v48, %v1488_v33  ;;  %v682_v59 = vrot.slane %v661_v50, %v1488_v33  ;;  %s1179_s30 = sshll.u32 %s1357_s7, 4  ;;  %s1180_s30 = int_to_ptr.vmem [resolvable:$true] %s1179_s30 }
 0x172   :  { %v627_v60 = vrot.slane %v612_v52, %v1488_v33  ;;  %v634_v61 = vrot.slane %v613_v53, %v1488_v33  ;;  %v641_v0 = vrot.slane %v589_v55, %v1488_v33  ;;  %s1317_s11 = scalar_lea.vmem %s1180_s30, 32  ;;  %p1322_p1 = scmp.lt.s32.totalorder %s1180_s30, %s1180_s30 }
 0x173   :  { %v690_v1 = vcombine.low %v668_v57, %v675_v58  ;;  %v691_v2 = vcombine.low %v682_v59, %v689_v62  ;;  %p1318_p0 = scmp.ne.s32.totalorder %s1180_s30, %s1317_s11  ;;  %p1323_p2 = scmp.lt.s32.totalorder %s1317_s11, %s1317_s11 }
 0x174   :  { %v642_v3 = vcombine.low %v620_v63, %v627_v60  ;;  %v643_v4 = vcombine.low %v634_v61, %v641_v0 }
 0x175   :  { %v698_v5 = vrot.slane %v690_v1, %v1488_v33  ;;  %v705_v6 = vrot.slane %v691_v2, %v1488_v33  ;;  %p1324_p3 = por %p1323_p2, %p1322_p1 }
 0x176   :  { %v650_v7 = vrot.slane %v642_v3, %v1488_v33  ;;  %v657_v8 = vrot.slane %v643_v4, %v1488_v33 }
 0x177   :  { %v706_v9 = vcombine.low %v698_v5, %v705_v6  ;;  %p1325_p4 = pnand %p1324_p3, %p1318_p0 }
 0x178   :  { %v658_v10 = vcombine.low %v650_v7, %v657_v8 }
 0x179   :  { %v717_v11 = vsel %vm709_vm6, %v706_v9, -inf }
 0x17a   :  { %v710_v12 = vsel %vm709_vm6, %v658_v10, -inf  ;;  %v718_v13 = vrot.slane %v717_v11, 4 }
 0x17b   :  { %v711_v14 = vrot.slane %v710_v12, 4 }
 0x17c   :  { %v719_v15 = vmax.f32 %v717_v11, %v718_v13 }
 0x17d   :  { %v712_v16 = vmax.f32 %v710_v12, %v711_v14 }
 0x17e   :  { %v720_v17 = vrot.slane %v719_v15, 2 }
 0x17f   :  { %v713_v18 = vrot.slane %v712_v16, 2 }
 0x180   :  { %v721_v19 = vmax.f32 %v719_v15, %v720_v17 }
 0x181   :  { %v714_v20 = vmax.f32 %v712_v16, %v713_v18 }
 0x182   :  { %v722_v21 = vrot.slane %v721_v19, 1 }
 0x183   :  { %v715_v22 = vrot.slane %v714_v20, 1 }
 0x184   :  { %v723_v23 = vmax.f32 %v721_v19, %v722_v21 }
 0x185   :  { %v716_v24 = vmax.f32 %v714_v20, %v715_v22 }
 0x187   :  { %v1031_v33 = vsel %vm1030_vm5, %v723_v23, %v716_v24 }
 0x1df   :  { %v1037_v25 = vpop.permute.xlu0 %1036 }
 0x1e0   :  { %v1040_v26 = vsel %vm1039_vm7, %v1031_v33, %v1037_v25 }
 0x1e1   :  { %1295 = vmatmul.mubr.msk.f32.vlgmr.msra.gmra.mxu0 %vm48_vm0, %v1040_v26 }
 0x2a1   :  { %v1121_v28 = vpop.f32.mrf.mxu0 }
 0x2a2   :  { %v1122_v29 = vadd.f32 %v1208_v27, %v1121_v28 }
 0x2a3   :  { %v1296_v43 = vpop.f32.mrf.mxu0 }
 0x2a4   :  { %v1210_v30 = vmul.f32 -1.442695, %v1122_v29  ;;  %v1136_v31 = vand.u32 2147483647, %v1122_v29  ;;  %v1133_v44 = vmax.f32 %v1122_v29, 0.0  ;;  %v1134_v45 = vmul.f32 %v1131_v40, %v1122_v29 }
 0x2a6   :  { %1309 = vpow2.f32 %v1210_v30  ;;  %v1137_v32 = vsub.f32 0.0, %v1136_v31  ;;  %v1135_v50 = vsub.f32 %v1133_v44, %v1134_v45 }
 0x2a8   :  { %v1138_v34 = vmul.f32 1.442695, %v1137_v32 }
 0x2aa   :  { %1311 = vpow2.f32 %v1138_v34 }
 0x2b3   :  { %v1310_v35 = vpop.eup %1309 }
 0x2b4   :  { %v1128_v36 = vadd.f32 1.0, %v1310_v35 }
 0x2b6   :  { %1313 = vrcp.f32 %v1128_v36 }
 0x2b7   :  { %v1312_v37 = vpop.eup %1311 }
 0x2b8   :  { %v1140_v38 = vadd.f32 1.0, %v1312_v37  ;;  %v1143_v39 = vmul.f32 -0.5, %v1312_v37  ;;  %v1146_v46 = vand.u32 2147483647, %v1312_v37 }
 0x2ba   :  { %1315 = vlog2.f32 %v1140_v38  ;;  %v1144_v42 = vadd.f32 1.0, %v1143_v39  ;;  %vm1147_vm8 = vcmp.lt.f32.partialorder %v1146_v46, 0.0004427343 }
 0x2bc   :  { %v1145_v49 = vmul.f32 %v1312_v37, %v1144_v42 }
 0x2c3   :  { %v1314_v41 = vpop.eup %1313 }
 0x2c4   :  { %1152 = vrot.lane.b32.xlu0 %v1314_v41, %s1356_s6 }
 0x2c7   :  { %v1316_v47 = vpop.eup %1315 }
 0x2c8   :  { %v1142_v48 = vmul.f32 0.6931472, %v1316_v47 }
 0x2ca   :  { %v1148_v52 = vsel %vm1147_vm8, %v1145_v49, %v1142_v48 }
 0x2cb   :  { %v1149_v53 = vadd.f32 %v1148_v52, %v1135_v50 }
 0x2cd   :  { %v1150_v54 = vmul.f32 %v1149_v53, %v1132_v51 }
 0x2cf   :  { %v1160_v55 = vsel %vm1159_vm9, %v1150_v54, 0.0 }
 0x2d0   :  { %1161 = vadd.xlane.f32.xlu1 %v1160_v55 }
 0x336   :  { %v1153_v56 = vpop.permute.xlu0 %1152 }
 0x337   :  { %v1156_v57 = vsel %vm1155_vm10, %v1122_v29, %v1153_v56 }
 0x338   :  { %1158 = vst.msk [vmem:[#allocation2] sm:$0x3] %vm1157_vm11, %v1156_v57 }
 0x339   :  { %1328 = shalt.err (!%p1325_p4)
}
 0x33a   :  { %1182 = dma.vmem_to_hbm [thread:$0]  %s1180_s30, 32, %s1628_s9, [#allocation3]  }
 0x33b   :  { %s1358_s15 = smov [#allocation5]  }
 0x359   :  { %v1162_v58 = vpop.xlane.xlu1 %1161 }
 0x35a   :  { %v1163_v59 = vrot.slane %v1162_v58, 4 }
 0x35c   :  { %v1164_v60 = vadd.f32 %v1163_v59, %v1162_v58 }
 0x35e   :  { %v1165_v61 = vrot.slane %v1164_v60, 2 }
 0x360   :  { %v1166_v62 = vadd.f32 %v1165_v61, %v1164_v60 }
 0x362   :  { %v1167_v63 = vrot.slane %v1166_v62, 1 }
 0x364   :  { %v1168_v0 = vadd.f32 %v1167_v63, %v1166_v62 }
 0x366   :  { %1297 = vpush %v1168_v0 }
 0x397   :  { %s1298_s13 = spop %1297 }
 0x398   :  { %s1170_s14 = smul.f32 0.041666668, %s1298_s13 }
 0x39a   :  { %1172 = sst [smem:[#allocation5]] %s1170_s14 }
 0x39b   :  { %1190 = dma.smem_to_hbm %s1358_s15, 16, %s1629_s10, [#allocation4]  }
 0x39c   :  { %1345 = dma.done.wait [#allocation3], 32  }
 0x39d   :  { %1346 = vsyncadd [#allocation3], 4294967264 }
 0x39e   :  { %1347 = dma.done.wait [#allocation4], 16  }
 0x39f   :  { %1348 = vsyncadd [#allocation4], 4294967280 }
 0x3a0   :  { %1197 = sfence }
 0x3a1   :  { %1198 = vsyncpa [#allocation3], 1 }
 0x3a2   :  { %1199 = vsyncpa [#allocation4], 1 }

</bundles_post_ra>
